<compile_context>
chip_gen: v6e
topology: v6e:2x2x1
jax: 0.10.0
libtpu: 0.0.40
codegen_flags: <defaults>
</compile_context>

<pallas_src>
import numpy as np
import jax
import jax.numpy as jnp
from jax.experimental import pallas as pl
from jax.experimental.pallas import tpu as pltpu


# Per-operand, per-block VMEM budget.  Worst case (2 inputs + 1 output, each
# double-buffered) is ~6x this (<= 24 MiB) which fits under the explicit
# 32 MiB scoped-VMEM request below on v5e (128 MiB), v6e (128) and v7x (64).
_BLOCK_BYTES_BUDGET = 4 * 1024 * 1024
_VMEM_LIMIT_BYTES = 32 * 1024 * 1024
# Below this total input size the whole forward pass is one pallas_call.
_FUSE_ALL_BYTES = 1 << 20


def _sublane_pack(dtype):
    # f32 -> 8, bf16 -> 16, int8/fp8 -> 32: packed rows travel together.
    return max(8, 32 // jnp.dtype(dtype).itemsize)


def _glu_f32(a, b):
    # a * sigmoid(b) == a / (1 + exp(-b)); exp rides the EUP.
    # (pl.reciprocal(approx=True) would free a VPU slot but loosens the 1e-5
    #  check against the exact reference, so keep the exact divide.)
    return a / (1.0 + jnp.exp(-b))


# ----------------------------- kernels --------------------------------------

def _glu_pair_kernel(a_ref, b_ref, o_ref):
    # Halves arrive pre-split (two BlockSpecs over the same array).
    a = a_ref[...].astype(jnp.float32)
    b = b_ref[...].astype(jnp.float32)
    o_ref[...] = _glu_f32(a, b).astype(o_ref.dtype)


def _glu_split_kernel(x_ref, o_ref):
    # Fallback for unaligned halves: full lane-dense row, split in-kernel.
    h = o_ref.shape[-1]
    v = x_ref[...].astype(jnp.float32)
    o_ref[...] = _glu_f32(v[:, :h], v[:, h:]).astype(o_ref.dtype)


def _glu_chain_pair_kernel(a_ref, b_ref, o1_ref, o2_ref):
    # Fused GLU(-1) followed by GLU(-1); halves pre-split, both splits on lanes.
    a = a_ref[...].astype(jnp.float32)
    b = b_ref[...].astype(jnp.float32)
    g = _glu_f32(a, b)
    o1_ref[...] = g.astype(o1_ref.dtype)
    h2 = o2_ref.shape[-1]
    o2_ref[...] = _glu_f32(g[:, :h2], g[:, h2:]).astype(o2_ref.dtype)


def _glu_chain_split_kernel(x_ref, o1_ref, o2_ref):
    h1 = o1_ref.shape[-1]
    h2 = o2_ref.shape[-1]
    v = x_ref[...].astype(jnp.float32)
    g = _glu_f32(v[:, :h1], v[:, h1:])
    o1_ref[...] = g.astype(o1_ref.dtype)
    o2_ref[...] = _glu_f32(g[:, :h2], g[:, h2:]).astype(o2_ref.dtype)


def _fused_model_kernel(x_ref, y_ref, z_ref, xo_ref, yo_ref, zo_ref, z2_ref):
    # All four GLUs of the tiny module-spec workload in one launch.
    def glu2d(v_ref, h):
        v = v_ref[...].astype(jnp.float32)
        return _glu_f32(v[:, :h], v[:, h:])

    xo_ref[...] = glu2d(x_ref, xo_ref.shape[-1]).astype(xo_ref.dtype)
    yo_ref[...] = glu2d(y_ref, yo_ref.shape[-1]).astype(yo_ref.dtype)
    g = glu2d(z_ref, zo_ref.shape[-1])
    zo_ref[...] = g.astype(zo_ref.dtype)
    h2 = z2_ref.shape[-1]
    z2_ref[...] = _glu_f32(g[:, :h2], g[:, h2:]).astype(z2_ref.dtype)


# --------------------------- tiling helpers ----------------------------------

def _row_tile(P, row_bytes, dtype):
    """Rows per block: as big as the budget allows, sublane-pack aligned, and
    split so the 1-D row grid has >= 2 steps (v7x megacore) when cheap."""
    sub = _sublane_pack(dtype)
    if P <= sub:
        return P                                   # one block == full extent
    tr = max(1, _BLOCK_BYTES_BUDGET // max(row_bytes, 1))
    tr = min(tr, P)
    tr = max(sub, (tr // sub) * sub)               # keep (8,128) sublane rule
    if tr >= P and P >= 2 * sub:
        half_rows = (P + 1) // 2
        half_rows = ((half_rows + sub - 1) // sub) * sub
        tr = min(P, half_rows)
    return tr


def _col_tile(hq, itemsize, rows):
    """Largest 128-multiple divisor of hq whose (rows x tc) block fits the
    per-block budget.  hq must already be a multiple of 128."""
    max_cols = max(128, (_BLOCK_BYTES_BUDGET // max(rows * itemsize, 1)) // 128 * 128)
    if hq <= max_cols:
        return hq
    m = hq // 128
    d = max(1, min(m, max_cols // 128))
    while m % d:
        d -= 1
    return d * 128


# ------------------------------ wrappers -------------------------------------

def glu(x, dim):
    """Pallas torch.nn.GLU(dim)(x): pure reshapes only, lane-dense layout."""
    dim = dim % x.ndim
    n = x.shape[dim]
    assert n % 2 == 0, "GLU split dimension must be even"
    half = n // 2
    out_shape = x.shape[:dim] + (half,) + x.shape[dim + 1:]

    P = int(np.prod(x.shape[:dim], dtype=np.int64))       # rows before split axis
    Q = int(np.prod(x.shape[dim + 1:], dtype=np.int64))   # cols after split axis
    hq = half * Q                        # contiguous elements of each half / row
    itemsize = jnp.dtype(x.dtype).itemsize

    # Pure reshape: halves of the split axis are x2[:, :hq] and x2[:, hq:].
    x2 = x.reshape(P, n * Q)

    if hq % 128 == 0:
        # Lane-dense fast path: pre-split halves via two BlockSpecs over the
        # same array; lane-aligned offsets, unmasked dense stores.
        tr = _row_tile(P, hq * itemsize, x.dtype)
        tc = _col_tile(hq, itemsize, tr)
        cshift = hq // tc                # block-column offset of the 2nd half
        grid = (pl.cdiv(P, tr), hq // tc)
        out2 = pl.pallas_call(
            _glu_pair_kernel,
            out_shape=jax.ShapeDtypeStruct((P, hq), x.dtype),
            grid=grid,
            in_specs=[pl.BlockSpec((tr, tc), lambda i, j: (i, j)),
                      pl.BlockSpec((tr, tc), lambda i, j: (i, j + cshift))],
            out_specs=pl.BlockSpec((tr, tc), lambda i, j: (i, j)),
            compiler_params=pltpu.CompilerParams(
                dimension_semantics=("parallel", "parallel"),
                vmem_limit_bytes=_VMEM_LIMIT_BYTES),
        )(x2, x2)
    else:
        # Unaligned halves: full lane-dense row per block (block last dim ==
        # array last dim, so the (8,128) rule is satisfied), split in-kernel.
        tr = _row_tile(P, n * Q * itemsize, x.dtype)
        grid = (pl.cdiv(P, tr),)
        out2 = pl.pallas_call(
            _glu_split_kernel,
            out_shape=jax.ShapeDtypeStruct((P, hq), x.dtype),
            grid=grid,
            in_specs=[pl.BlockSpec((tr, n * Q), lambda i: (i, 0))],
            out_specs=pl.BlockSpec((tr, hq), lambda i: (i, 0)),
            compiler_params=pltpu.CompilerParams(
                dimension_semantics=("parallel",),
                vmem_limit_bytes=_VMEM_LIMIT_BYTES),
        )(x2)

    return out2.reshape(out_shape)


def glu_last_chain(z):
    """Fused GLU(dim=-1) followed by GLU(dim=-1) of the result: one launch,
    two outputs, both splits along the lane axis."""
    n = z.shape[-1]
    assert n % 4 == 0
    half1, half2 = n // 2, n // 4
    lead = z.shape[:-1]
    P = int(np.prod(lead, dtype=np.int64)) if lead else 1
    itemsize = jnp.dtype(z.dtype).itemsize
    z2d = z.reshape(P, n)

    if half1 % 128 == 0 and half2 % 128 == 0:
        tr = _row_tile(P, half1 * itemsize, z.dtype)
        grid = (pl.cdiv(P, tr),)
        o1, o2 = pl.pallas_call(
            _glu_chain_pair_kernel,
            out_shape=(jax.ShapeDtypeStruct((P, half1), z.dtype),
                       jax.ShapeDtypeStruct((P, half2), z.dtype)),
            grid=grid,
            in_specs=[pl.BlockSpec((tr, half1), lambda i: (i, 0)),
                      pl.BlockSpec((tr, half1), lambda i: (i, 1))],
            out_specs=(pl.BlockSpec((tr, half1), lambda i: (i, 0)),
                       pl.BlockSpec((tr, half2), lambda i: (i, 0))),
            compiler_params=pltpu.CompilerParams(
                dimension_semantics=("parallel",),
                vmem_limit_bytes=_VMEM_LIMIT_BYTES),
        )(z2d, z2d)
    else:
        tr = _row_tile(P, n * itemsize, z.dtype)
        grid = (pl.cdiv(P, tr),)
        o1, o2 = pl.pallas_call(
            _glu_chain_split_kernel,
            out_shape=(jax.ShapeDtypeStruct((P, half1), z.dtype),
                       jax.ShapeDtypeStruct((P, half2), z.dtype)),
            grid=grid,
            in_specs=[pl.BlockSpec((tr, n), lambda i: (i, 0))],
            out_specs=(pl.BlockSpec((tr, half1), lambda i: (i, 0)),
                       pl.BlockSpec((tr, half2), lambda i: (i, 0))),
            compiler_params=pltpu.CompilerParams(
                dimension_semantics=("parallel",),
                vmem_limit_bytes=_VMEM_LIMIT_BYTES),
        )(z2d)
    return o1.reshape(lead + (half1,)), o2.reshape(lead + (half2,))


def _model_forward_fused(x, y, z):
    """All four GLUs in ONE pallas_call (full arrays in VMEM, no grid) — the
    launch overhead of three separate calls dominates at tiny sizes."""
    hx = x.shape[0] // 2
    hy = y.shape[1] // 2
    hz1, hz2 = z.shape[-1] // 2, z.shape[-1] // 4
    Qx = int(np.prod(x.shape[1:], dtype=np.int64))
    Qy = int(np.prod(y.shape[2:], dtype=np.int64))
    Pz = int(np.prod(z.shape[:-1], dtype=np.int64))

    x2 = x.reshape(1, x.shape[0] * Qx)
    y2 = y.reshape(y.shape[0], y.shape[1] * Qy)
    z2d = z.reshape(Pz, z.shape[-1])

    xo, yo, zo, z2o = pl.pallas_call(
        _fused_model_kernel,
        out_shape=(jax.ShapeDtypeStruct((1, hx * Qx), x.dtype),
                   jax.ShapeDtypeStruct((y.shape[0], hy * Qy), y.dtype),
                   jax.ShapeDtypeStruct((Pz, hz1), z.dtype),
                   jax.ShapeDtypeStruct((Pz, hz2), z.dtype)),
    )(x2, y2, z2d)

    return (xo.reshape((hx,) + x.shape[1:]),
            yo.reshape((y.shape[0], hy) + y.shape[2:]),
            zo.reshape(z.shape[:-1] + (hz1,)),
            z2o.reshape(z.shape[:-1] + (hz2,)))


def model_forward(x, y, z):
    """Mirrors Model.forward: GLU(0)(x), GLU(1)(y), GLU(2)(z), GLU(-1)(of that)."""
    itemsize = jnp.dtype(z.dtype).itemsize
    chain_ok = (z.ndim == 3 and z.shape[-1] % 4 == 0
                and _sublane_pack(z.dtype) * z.shape[-1] * itemsize
                    <= _BLOCK_BYTES_BUDGET)
    total_bytes = (x.size * jnp.dtype(x.dtype).itemsize
                   + y.size * jnp.dtype(y.dtype).itemsize
                   + z.size * itemsize)

    if (chain_ok and total_bytes <= _FUSE_ALL_BYTES
            and x.shape[0] % 2 == 0
            and y.ndim >= 2 and y.shape[1] % 2 == 0):
        return _model_forward_fused(x, y, z)

    xo = glu(x, 0)
    yo = glu(y, 1)
    if chain_ok:
        zo, z2 = glu_last_chain(z)
    else:
        zo = glu(z, 2)
        z2 = glu(zo, -1)
    return xo, yo, zo, z2


# ------------------------------- test ----------------------------------------

def _glu_ref(v, dim):
    a, b = jnp.split(v, 2, axis=dim)
    return a * jax.nn.sigmoid(b)


if __name__ == "__main__":
    key = jax.random.PRNGKey(0)
    kx, ky, kz, k1, k2, k3, k4 = jax.random.split(key, 7)

    # --- Module-spec shapes (tiny): exercises the single fused launch. ------
    x = jax.random.uniform(kx, (16,), dtype=jnp.float32)        # GLU dim=0
    y = jax.random.uniform(ky, (2, 32), dtype=jnp.float32)      # GLU dim=1
    z = jax.random.uniform(kz, (2, 4, 32), dtype=jnp.float32)   # GLU dim=2, then -1

    ox, oy, oz, oz2 = jax.block_until_ready(model_forward(x, y, z))

    rx = _glu_ref(x, 0)
    ry = _glu_ref(y, 1)
    rz = _glu_ref(z, 2)
    rz2 = _glu_ref(rz, -1)
    for got, ref in ((ox, rx), (oy, ry), (oz, rz), (oz2, rz2)):
        np.testing.assert_allclose(np.asarray(got), np.asarray(ref),
                                   rtol=1e-5, atol=1e-5)
    assert ox.shape == (8,) and oy.shape == (2, 16)
    assert oz.shape == (2, 4, 16) and oz2.shape == (2, 4, 8)

    # --- Exercise the general lane-dense paths on modest larger shapes. -----
    a = jax.random.normal(k1, (64, 256), dtype=jnp.float32)      # aligned, 2 row blocks
    np.testing.assert_allclose(np.asarray(glu(a, 1)),
                               np.asarray(_glu_ref(a, 1)), rtol=1e-5, atol=1e-5)

    b = jax.random.normal(k2, (4, 256, 128), dtype=jnp.float32)  # dim=1, aligned (Q=128)
    np.testing.assert_allclose(np.asarray(glu(b, 1)),
                               np.asarray(_glu_ref(b, 1)), rtol=1e-5, atol=1e-5)

    c = jax.random.normal(k3, (2, 10, 24), dtype=jnp.float32)    # unaligned fallback
    np.testing.assert_allclose(np.asarray(glu(c, 1)),
                               np.asarray(_glu_ref(c, 1)), rtol=1e-5, atol=1e-5)

    d = jax.random.normal(k4, (16, 512), dtype=jnp.float32)      # fused GLU->GLU chain
    d1, d2 = jax.block_until_ready(glu_last_chain(d))
    rd1 = _glu_ref(d, -1)
    rd2 = _glu_ref(rd1, -1)
    np.testing.assert_allclose(np.asarray(d1), np.asarray(rd1), rtol=1e-5, atol=1e-5)
    np.testing.assert_allclose(np.asarray(d2), np.asarray(rd2), rtol=1e-5, atol=1e-5)

    print("KERNEL_OK")
</pallas_src>

<mosaic_0001>
module attributes {stable_mosaic.version = 11 : i64} {
  func.func @_fused_model_kernel(%arg0: memref<1x16xf32, #tpu.memory_space<vmem>>, %arg1: memref<2x32xf32, #tpu.memory_space<vmem>>, %arg2: memref<8x32xf32, #tpu.memory_space<vmem>>, %arg3: memref<1x8xf32, #tpu.memory_space<vmem>>, %arg4: memref<2x16xf32, #tpu.memory_space<vmem>>, %arg5: memref<8x16xf32, #tpu.memory_space<vmem>>, %arg6: memref<8x8xf32, #tpu.memory_space<vmem>>) attributes {dimension_semantics = [], scalar_prefetch = 0 : i64, scratch_operands = 0 : i64, tpu.core_type = #tpu.core_type<tc>} {
    %c0 = arith.constant 0 : index
    %c0_0 = arith.constant 0 : index
    %0 = vector.load %arg0[%c0, %c0_0] : memref<1x16xf32, #tpu.memory_space<vmem>>, vector<1x16xf32>
    %1 = vector.extract_strided_slice %0 {offsets = [0, 0], sizes = [1, 8], strides = [1, 1]} : vector<1x16xf32> to vector<1x8xf32>
    %2 = vector.extract_strided_slice %0 {offsets = [0, 8], sizes = [1, 8], strides = [1, 1]} : vector<1x16xf32> to vector<1x8xf32>
    %cst = arith.constant 0.000000e+00 : f32
    %3 = vector.broadcast %cst : f32 to vector<1x8xf32>
    %4 = arith.subf %3, %2 : vector<1x8xf32>
    %5 = math.exp %4 : vector<1x8xf32>
    %cst_1 = arith.constant 1.000000e+00 : f32
    %6 = vector.broadcast %cst_1 : f32 to vector<1x8xf32>
    %7 = arith.addf %6, %5 : vector<1x8xf32>
    %8 = arith.divf %1, %7 : vector<1x8xf32>
    %c0_2 = arith.constant 0 : index
    %c0_3 = arith.constant 0 : index
    %9 = vector.load %arg3[%c0_2, %c0_3] : memref<1x8xf32, #tpu.memory_space<vmem>>, vector<1x8xf32>
    tpu.vector_store %arg3[%c0_2, %c0_3], %8 {strides = array<i32>} : memref<1x8xf32, #tpu.memory_space<vmem>>, vector<1x8xf32>,
    %c0_4 = arith.constant 0 : index
    %c0_5 = arith.constant 0 : index
    %10 = vector.load %arg1[%c0_4, %c0_5] : memref<2x32xf32, #tpu.memory_space<vmem>>, vector<2x32xf32>
    %11 = vector.extract_strided_slice %10 {offsets = [0, 0], sizes = [2, 16], strides = [1, 1]} : vector<2x32xf32> to vector<2x16xf32>
    %12 = vector.extract_strided_slice %10 {offsets = [0, 16], sizes = [2, 16], strides = [1, 1]} : vector<2x32xf32> to vector<2x16xf32>
    %cst_6 = arith.constant 0.000000e+00 : f32
    %13 = vector.broadcast %cst_6 : f32 to vector<2x16xf32>
    %14 = arith.subf %13, %12 : vector<2x16xf32>
    %15 = math.exp %14 : vector<2x16xf32>
    %cst_7 = arith.constant 1.000000e+00 : f32
    %16 = vector.broadcast %cst_7 : f32 to vector<2x16xf32>
    %17 = arith.addf %16, %15 : vector<2x16xf32>
    %18 = arith.divf %11, %17 : vector<2x16xf32>
    %c0_8 = arith.constant 0 : index
    %c0_9 = arith.constant 0 : index
    %19 = vector.load %arg4[%c0_8, %c0_9] : memref<2x16xf32, #tpu.memory_space<vmem>>, vector<2x16xf32>
    tpu.vector_store %arg4[%c0_8, %c0_9], %18 {strides = array<i32>} : memref<2x16xf32, #tpu.memory_space<vmem>>, vector<2x16xf32>,
    %c0_10 = arith.constant 0 : index
    %c0_11 = arith.constant 0 : index
    %20 = vector.load %arg2[%c0_10, %c0_11] : memref<8x32xf32, #tpu.memory_space<vmem>>, vector<8x32xf32>
    %21 = vector.extract_strided_slice %20 {offsets = [0, 0], sizes = [8, 16], strides = [1, 1]} : vector<8x32xf32> to vector<8x16xf32>
    %22 = vector.extract_strided_slice %20 {offsets = [0, 16], sizes = [8, 16], strides = [1, 1]} : vector<8x32xf32> to vector<8x16xf32>
    %cst_12 = arith.constant 0.000000e+00 : f32
    %23 = vector.broadcast %cst_12 : f32 to vector<8x16xf32>
    %24 = arith.subf %23, %22 : vector<8x16xf32>
    %25 = math.exp %24 : vector<8x16xf32>
    %cst_13 = arith.constant 1.000000e+00 : f32
    %26 = vector.broadcast %cst_13 : f32 to vector<8x16xf32>
    %27 = arith.addf %26, %25 : vector<8x16xf32>
    %28 = arith.divf %21, %27 : vector<8x16xf32>
    %c0_14 = arith.constant 0 : index
    %c0_15 = arith.constant 0 : index
    %29 = vector.load %arg5[%c0_14, %c0_15] : memref<8x16xf32, #tpu.memory_space<vmem>>, vector<8x16xf32>
    tpu.vector_store %arg5[%c0_14, %c0_15], %28 {strides = array<i32>} : memref<8x16xf32, #tpu.memory_space<vmem>>, vector<8x16xf32>,
    %30 = vector.extract_strided_slice %28 {offsets = [0, 0], sizes = [8, 8], strides = [1, 1]} : vector<8x16xf32> to vector<8x8xf32>
    %31 = vector.extract_strided_slice %28 {offsets = [0, 8], sizes = [8, 8], strides = [1, 1]} : vector<8x16xf32> to vector<8x8xf32>
    %cst_16 = arith.constant 0.000000e+00 : f32
    %32 = vector.broadcast %cst_16 : f32 to vector<8x8xf32>
    %33 = arith.subf %32, %31 : vector<8x8xf32>
    %34 = math.exp %33 : vector<8x8xf32>
    %cst_17 = arith.constant 1.000000e+00 : f32
    %35 = vector.broadcast %cst_17 : f32 to vector<8x8xf32>
    %36 = arith.addf %35, %34 : vector<8x8xf32>
    %37 = arith.divf %30, %36 : vector<8x8xf32>
    %c0_18 = arith.constant 0 : index
    %c0_19 = arith.constant 0 : index
    %38 = vector.load %arg6[%c0_18, %c0_19] : memref<8x8xf32, #tpu.memory_space<vmem>>, vector<8x8xf32>
    tpu.vector_store %arg6[%c0_18, %c0_19], %37 {strides = array<i32>} : memref<8x8xf32, #tpu.memory_space<vmem>>, vector<8x8xf32>,
    return
  }
}

</mosaic_0001>

<bundles_post_ra>
// kernel: tpu_custom_call.1
= control target key start
LH: loop header
LB: loop body
LE: loop exit
PB: predicated region body
PF: predicated region fallthrough
CT: control target
= control target key end

     0   :  { %12 = vsyncpa [#allocation3], 0  ;;  %s406_s0 = inlined_call_operand.hbm [shape: f32[1,16], index: 0, kind: input, shape index: {}]   ;;  %s407_s1 = inlined_call_operand.hbm [shape: f32[2,32], index: 1, kind: input, shape index: {}]   ;;  %s408_s2 = inlined_call_operand.hbm [shape: f32[8,32], index: 2, kind: input, shape index: {}]   ;;  %s409_s3 = inlined_call_operand.hbm [shape: f32[1,8], index: 3, kind: output, shape index: {0}]   ;;  %s410_s4 = inlined_call_operand.hbm [shape: f32[2,16], index: 4, kind: output, shape index: {1}]   ;;  %s411_s5 = inlined_call_operand.hbm [shape: f32[8,16], index: 5, kind: output, shape index: {2}]   ;;  %s412_s6 = inlined_call_operand.hbm [shape: f32[8,8], index: 6, kind: output, shape index: {3}]  }
   0x1   :  { %13 = vsyncpa [#allocation6], 0 }
   0x2   :  { %14 = vsyncpa [#allocation4], 0 }
   0x3   :  { %15 = vsyncpa [#allocation10], 0 }
   0x4   :  { %16 = vsyncpa [#allocation13], 0  ;;  %s339_s21 = smov [#allocation5]   ;;  %s340_s23 = smov [#allocation2]  }
   0x5   :  { %s33_s22 = sshll.u32 %s339_s21, 4  ;;  %s23_s24 = sshll.u32 %s340_s23, 4  ;;  %s34_s22 = int_to_ptr.vmem [resolvable:$true] %s33_s22  ;;  %s24_s24 = int_to_ptr.vmem [resolvable:$true] %s23_s24 }
   0x6   :  { %s197_s25 = scalar_lea.vmem %s34_s22, 32  ;;  %p202_p1 = scmp.lt.s32.totalorder %s34_s22, %s34_s22 }
   0x7   :  { %p198_p0 = scmp.ne.s32.totalorder %s34_s22, %s197_s25  ;;  %p203_p2 = scmp.lt.s32.totalorder %s197_s25, %s197_s25 }
   0x9   :  { %p204_p3 = por %p203_p2, %p202_p1 }
   0xb   :  { %p205_p4 = pnand %p204_p3, %p198_p0 }
   0xd   :  { %208 = shalt.err (!%p205_p4)
}
   0xe   :  { %36 = dma.hbm_to_vmem [thread:$0]  %s407_s1, 32, %s34_s22, [#allocation6]  }
   0xf   :  { %s217_s28 = scalar_lea.vmem %s24_s24, 16  ;;  %s221_s29 = scalar_lea.vmem %s24_s24, 32 }
  0x10   :  { %p218_p5 = scmp.ne.s32.totalorder %s24_s24, %s217_s28  ;;  %p222_p6 = scmp.lt.s32.totalorder %s24_s24, %s24_s24 }
  0x11   :  { %p223_p7 = scmp.lt.s32.totalorder %s221_s29, %s217_s28 }
  0x13   :  { %p224_p8 = por %p223_p7, %p222_p6 }
  0x15   :  { %p225_p9 = pnand %p224_p8, %p218_p5 }
  0x17   :  { %228 = shalt.err (!%p225_p9)
}
  0x18   :  { %26 = dma.hbm_to_vmem [thread:$0]  %s406_s0, 16, %s24_s24, [#allocation3]  }
  0x19   :  { %s341_s8 = smov [#allocation7]  }
  0x1a   :  { %s43_s9 = sshll.u32 %s341_s8, 4  ;;  %s44_s9 = int_to_ptr.vmem [resolvable:$true] %s43_s9 }
  0x1b   :  { %s237_s10 = scalar_lea.vmem %s44_s9, 128  ;;  %p242_p11 = scmp.lt.s32.totalorder %s44_s9, %s44_s9 }
  0x1c   :  { %p238_p10 = scmp.ne.s32.totalorder %s44_s9, %s237_s10  ;;  %p243_p12 = scmp.lt.s32.totalorder %s237_s10, %s237_s10 }
  0x1e   :  { %p244_p13 = por %p243_p12, %p242_p11 }
  0x20   :  { %p245_p0 = pnand %p244_p13, %p238_p10 }
  0x22   :  { %248 = shalt.err (!%p245_p0)
}
  0x23   :  { %46 = dma.hbm_to_vmem [thread:$0]  %s408_s2, 128, %s44_s9, [#allocation6]  }
  0x24   :  { %329 = dma.done.wait [#allocation3], 16  }
  0x25   :  { %330 = vsyncadd [#allocation3], 4294967280 }
  0x26   :  { %331 = dma.done.wait [#allocation6], 160  }
  0x27   :  { %332 = vsyncadd [#allocation6], 4294967136  ;;  %v82_v0 = vld [vmem:[#allocation7] sm:$0xff]  ;;  %v56_v3 = vld [vmem:[#allocation2] sm:$0x1]  ;;  %s342_s0 = smov 112  }
  0x28   :  { %v83_v1 = vsub.f32 0.0, %v82_v0  ;;  %v69_v4 = vld [vmem:[#allocation5] sm:$0x3]  ;;  %v57_v5 = vsub.f32 0.0, %v56_v3  ;;  %s343_s2 = smov 120   ;;  %vm93_vm0 = vcmask 130048  }
  0x29   :  { %v70_v6 = vsub.f32 0.0, %v69_v4  ;;  %vm80_vm1 = vcmask 123904   ;;  %vm67_vm2 = vcmask 57344   ;;  %s344_s12 = smov [#allocation9]   ;;  %s345_s14 = smov [#allocation8]  }
  0x2a   :  { %v84_v2 = vmul.f32 1.442695, %v83_v1  ;;  %v58_v7 = vmul.f32 1.442695, %v57_v5  ;;  %s123_s13 = sshll.u32 %s344_s12, 4  ;;  %s113_s15 = sshll.u32 %s345_s14, 4  ;;  %s124_s13 = int_to_ptr.vmem [resolvable:$true] %s123_s13  ;;  %s114_s15 = int_to_ptr.vmem [resolvable:$true] %s113_s15 }
  0x2b   :  { %v71_v8 = vmul.f32 1.442695, %v70_v6  ;;  %s249_s16 = scalar_lea.vmem %s124_s13, 32  ;;  %p254_p2 = scmp.lt.s32.totalorder %s124_s13, %s124_s13 }
  0x2c   :  { %173 = vpow2.f32 %v84_v2  ;;  %p250_p1 = scmp.ne.s32.totalorder %s124_s13, %s249_s16  ;;  %p255_p3 = scmp.lt.s32.totalorder %s249_s16, %s249_s16 }
  0x2d   :  { %175 = vpow2.f32 %v58_v7 }
  0x2e   :  { %177 = vpow2.f32 %v71_v8  ;;  %p256_p4 = por %p255_p3, %p254_p2 }
  0x30   :  { %p257_p5 = pnand %p256_p4, %p250_p1 }
  0x39   :  { %v174_v9 = vpop.eup %173 }
  0x3a   :  { %v86_v10 = vadd.f32 1.0, %v174_v9  ;;  %v176_v11 = vpop.eup %175 }
  0x3b   :  { %v178_v12 = vpop.eup %177  ;;  %v60_v13 = vadd.f32 1.0, %v176_v11 }
  0x3c   :  { %88 = vrot.lane.b32.xlu0 %v86_v10, %s342_s0  ;;  %v73_v14 = vadd.f32 1.0, %v178_v12 }
  0x3d   :  { %62 = vrot.lane.b32.xlu1 %v60_v13, %s343_s2 }
  0x40   :  { %75 = vrot.lane.b32.xlu0 %v73_v14, %s342_s0 }
  0xae   :  { %v89_v15 = vpop.permute.xlu0 %88 }
  0xaf   :  { %179 = vrcp.f32 %v89_v15  ;;  %v63_v16 = vpop.permute.xlu1 %62 }
  0xb0   :  { %181 = vrcp.f32 %v63_v16 }
  0xb2   :  { %v76_v17 = vpop.permute.xlu0 %75 }
  0xb3   :  { %183 = vrcp.f32 %v76_v17 }
  0xbc   :  { %v180_v18 = vpop.eup %179 }
  0xbd   :  { %v92_v19 = vmul.f32 %v180_v18, %v82_v0  ;;  %v182_v22 = vpop.eup %181 }
  0xbe   :  { %v66_v25 = vmul.f32 %v182_v22, %v56_v3 }
  0xbf   :  { %v95_v20 = vsub.f32 0.0, %v92_v19  ;;  %94 = vst.msk [vmem:[#allocation11] sm:$0xff] %vm93_vm0, %v92_v19 }
  0xc0   :  { %v184_v23 = vpop.eup %183  ;;  %68 = vst.msk [vmem:[#allocation8] sm:$0x1] %vm67_vm2, %v66_v25 }
  0xc1   :  { %v96_v21 = vmul.f32 1.442695, %v95_v20  ;;  %v79_v24 = vmul.f32 %v184_v23, %v69_v4 }
  0xc3   :  { %185 = vpow2.f32 %v96_v21  ;;  %81 = vst.msk [vmem:[#allocation9] sm:$0x3] %vm80_vm1, %v79_v24 }
  0xc4   :  { %260 = shalt.err (!%p257_p5)
}
  0xc5   :  { %126 = dma.vmem_to_hbm [thread:$0]  %s124_s13, 32, %s410_s4, [#allocation10]  }
  0xc6   :  { %s269_s19 = scalar_lea.vmem %s114_s15, 16  ;;  %s273_s20 = scalar_lea.vmem %s114_s15, 32 }
  0xc7   :  { %p270_p6 = scmp.ne.s32.totalorder %s114_s15, %s269_s19  ;;  %p274_p7 = scmp.lt.s32.totalorder %s114_s15, %s114_s15 }
  0xc8   :  { %p275_p8 = scmp.lt.s32.totalorder %s273_s20, %s269_s19 }
  0xca   :  { %p276_p9 = por %p275_p8, %p274_p7 }
  0xcc   :  { %p277_p10 = pnand %p276_p9, %p270_p6 }
  0xce   :  { %280 = shalt.err (!%p277_p10)
}
  0xcf   :  { %116 = dma.vmem_to_hbm [thread:$0]  %s114_s15, 16, %s409_s3, [#allocation4]  }
  0xd0   :  { %s346_s23 = smov [#allocation11]  }
  0xd1   :  { %s133_s24 = sshll.u32 %s346_s23, 4  ;;  %s134_s24 = int_to_ptr.vmem [resolvable:$true] %s133_s24 }
  0xd2   :  { %s289_s25 = scalar_lea.vmem %s134_s24, 128  ;;  %p294_p12 = scmp.lt.s32.totalorder %s134_s24, %s134_s24 }
  0xd3   :  { %p290_p11 = scmp.ne.s32.totalorder %s134_s24, %s289_s25  ;;  %p295_p13 = scmp.lt.s32.totalorder %s289_s25, %s289_s25 }
  0xd5   :  { %p296_p0 = por %p295_p13, %p294_p12 }
  0xd7   :  { %p297_p1 = pnand %p296_p0, %p290_p11 }
  0xd9   :  { %300 = shalt.err (!%p297_p1)
}
  0xda   :  { %136 = dma.vmem_to_hbm [thread:$0]  %s134_s24, 128, %s411_s5, [#allocation10]   ;;  %v186_v26 = vpop.eup %185  ;;  %vm105_vm3 = vcmask 64512  }
  0xdb   :  { %v98_v27 = vadd.f32 1.0, %v186_v26  ;;  %s347_s3 = smov [#allocation12]  }
  0xdc   :  { %s143_s27 = sshll.u32 %s347_s3, 4  ;;  %s144_s27 = int_to_ptr.vmem [resolvable:$true] %s143_s27 }
  0xdd   :  { %100 = vrot.lane.b32.xlu1 %v98_v27, %s343_s2  ;;  %s309_s28 = scalar_lea.vmem %s144_s27, 128  ;;  %p314_p3 = scmp.lt.s32.totalorder %s144_s27, %s144_s27 }
  0xde   :  { %p310_p2 = scmp.ne.s32.totalorder %s144_s27, %s309_s28  ;;  %p315_p4 = scmp.lt.s32.totalorder %s309_s28, %s309_s28 }
  0xe0   :  { %p316_p5 = por %p315_p4, %p314_p3 }
  0xe2   :  { %p317_p6 = pnand %p316_p5, %p310_p2 }
 0x14f   :  { %v101_v28 = vpop.permute.xlu1 %100 }
 0x150   :  { %187 = vrcp.f32 %v101_v28 }
 0x15d   :  { %v188_v29 = vpop.eup %187 }
 0x15e   :  { %v104_v30 = vmul.f32 %v188_v29, %v92_v19 }
 0x160   :  { %106 = vst.msk [vmem:[#allocation12] sm:$0xff] %vm105_vm3, %v104_v30 }
 0x161   :  { %320 = shalt.err (!%p317_p6)
}
 0x162   :  { %146 = dma.vmem_to_hbm [thread:$0]  %s144_s27, 128, %s412_s6, [#allocation13]  }
 0x163   :  { %333 = dma.done.wait [#allocation4], 16  }
 0x164   :  { %334 = vsyncadd [#allocation4], 4294967280 }
 0x165   :  { %335 = dma.done.wait [#allocation10], 160  }
 0x166   :  { %336 = vsyncadd [#allocation10], 4294967136 }
 0x167   :  { %337 = dma.done.wait [#allocation13], 128  }
 0x168   :  { %338 = vsyncadd [#allocation13], 4294967168 }
 0x169   :  { %159 = vsyncpa [#allocation3], 1 }
 0x16a   :  { %160 = vsyncpa [#allocation6], 1 }
 0x16b   :  { %161 = vsyncpa [#allocation4], 1 }
 0x16c   :  { %162 = vsyncpa [#allocation10], 1 }
 0x16d   :  { %163 = vsyncpa [#allocation13], 1 }

</bundles_post_ra>
